<compile_context>
chip_gen: v7x
topology: tpu7x:2x2x1
jax: 0.10.0
libtpu: 0.0.40
codegen_flags: <defaults>
</compile_context>

<pallas_src>
import functools

import jax
import jax.numpy as jnp
from jax.experimental import pallas as pl
from jax.experimental.pallas import tpu as pltpu


# ---------------------------------------------------------------------------
# helpers
# ---------------------------------------------------------------------------
def _round_up(x, m):
    return ((x + m - 1) // m) * m


def _padded_nodes(n):
    # <=512 nodes: single small tile; larger: pad to a multiple of 512 so the
    # candidate row/col tiles divide evenly.
    if n <= 512:
        return _round_up(n, 128)
    return _round_up(n, 512)


@functools.lru_cache(maxsize=None)
def _vmem_budget_and_limit():
    """(tile working-set budget, vmem_limit_bytes) sized to the current chip.

    Conservative fallback is 64 MiB (v7x per-TensorCore VMEM); v5e/v6e report
    128 MiB via get_tpu_info and get a larger budget.  budget < limit < phys
    so the enlarged tiles always compile.
    """
    phys = 64 << 20
    try:
        info = pltpu.get_tpu_info()
        phys = int(getattr(info, "vmem_capacity_bytes", phys))
    except Exception:
        pass
    limit = min(int(phys * 0.8), 100 << 20)
    budget = int(limit * 0.8)
    return budget, limit


def _pick_agg_tiles(n_pad, f_pad_out, out_bytes, budget):
    """Pick (tm, tk, hl_resident) for the aggregation matmul.

    Prefers H_l VMEM-resident (tk = n_pad, 1-D row grid); falls back to a 2-D
    grid with the largest tiles that fit the VMEM budget (double-buffered).
    """
    def resident_bytes(tm):
        return (2 * tm * n_pad * 2            # C tile (bf16), double-buffered
                + 2 * n_pad * f_pad_out * 2   # H_l resident (bf16)
                + 2 * tm * f_pad_out * 4      # R (f32)
                + 2 * tm * 128 * 4            # 1/deg (lane-padded f32)
                + 2 * tm * f_pad_out * out_bytes)

    def tiled_bytes(tm, tk):
        return (2 * tm * tk * 2
                + 2 * tk * f_pad_out * 2
                + 2 * tm * f_pad_out * 4
                + 2 * tm * 128 * 4
                + 2 * tm * f_pad_out * out_bytes
                + tm * f_pad_out * 4)         # accumulator scratch

    # Case A: H_l resident, single contraction step.  Keep >=2 row tiles for
    # larger graphs so the "parallel" row axis can feed both v7x TensorCores.
    row_cands = [t for t in (2048, 1024, 512, 256, 128)
                 if t <= max(n_pad // 2, 128)]
    if n_pad <= 512 and n_pad not in row_cands:
        row_cands.insert(0, n_pad)
    for tm in row_cands:
        if n_pad % tm == 0 and resident_bytes(tm) <= budget:
            return tm, n_pad, True

    # Case B: 2-D grid, reduction over the column axis with big tiles.
    for tm in (1024, 512, 256):
        if n_pad % tm:
            continue
        for tk in (8192, 4096, 2048, 1024, 512):
            if tk <= n_pad and n_pad % tk == 0 and tiled_bytes(tm, tk) <= budget:
                return tm, tk, False
    return 256, 512, False     # last-resort small tiles (always fits)


# ---------------------------------------------------------------------------
# Kernel 1: fused linear  Z = X @ [W_l | W_r]  ->  H_l (bf16), R = XW_r + b (f32)
# (bf16 operands, f32 MXU accumulation)
# ---------------------------------------------------------------------------
def _linear_kernel(x_ref, w_ref, b_ref, hl_ref, r_ref, *, f_pad_out):
    z = jnp.dot(x_ref[...], w_ref[...], preferred_element_type=jnp.float32)
    hl_ref[...] = z[:, :f_pad_out].astype(hl_ref.dtype)
    r_ref[...] = z[:, f_pad_out:] + b_ref[...]


def _fused_linear(x_pad, w_cat, b_pad, f_pad_out):
    n_pad, f_pad_in = x_pad.shape
    tm = n_pad if n_pad <= 512 else 512
    _, vmem_limit = _vmem_budget_and_limit()
    kern = functools.partial(_linear_kernel, f_pad_out=f_pad_out)
    return pl.pallas_call(
        kern,
        out_shape=(jax.ShapeDtypeStruct((n_pad, f_pad_out), jnp.bfloat16),
                   jax.ShapeDtypeStruct((n_pad, f_pad_out), jnp.float32)),
        grid=(n_pad // tm,),
        in_specs=[
            pl.BlockSpec((tm, f_pad_in), lambda i: (i, 0)),
            pl.BlockSpec((f_pad_in, 2 * f_pad_out), lambda i: (0, 0)),
            pl.BlockSpec((1, f_pad_out), lambda i: (0, 0)),
        ],
        out_specs=(pl.BlockSpec((tm, f_pad_out), lambda i: (i, 0)),
                   pl.BlockSpec((tm, f_pad_out), lambda i: (i, 0))),
        compiler_params=pltpu.CompilerParams(
            dimension_semantics=("parallel",),
            vmem_limit_bytes=vmem_limit),
    )(x_pad, w_cat, b_pad)


# ---------------------------------------------------------------------------
# Kernel 2: aggregation  out = inv_deg * (C @ H_l) + R  (+ act / log_softmax)
# ---------------------------------------------------------------------------
def _epilogue(acc, inv, r, activation, final_log_softmax, f_out):
    out = inv * acc + r
    if activation == "relu":
        out = jnp.maximum(out, 0.0)
    elif activation == "sigmoid":
        out = jax.nn.sigmoid(out)              # EUP slot (cheap)
    if final_log_softmax:
        # Mask padded feature lanes so the logsumexp only covers real cols.
        col = jax.lax.broadcasted_iota(jnp.int32, out.shape, 1)
        out = jnp.where(col < f_out, out, jnp.float32(-1e30))
        m = jnp.max(out, axis=-1, keepdims=True)
        s = out - m
        lse = jnp.log(jnp.sum(jnp.exp(s), axis=-1, keepdims=True))
        out = s - lse
    return out


def _agg_kernel_resident(a_ref, hl_ref, inv_ref, r_ref, o_ref, *,
                         activation, final_log_softmax, f_out):
    # Whole contraction in one dot: H_l is VMEM-resident, no k loop / scratch.
    acc = jnp.dot(a_ref[...], hl_ref[...], preferred_element_type=jnp.float32)
    o_ref[...] = _epilogue(acc, inv_ref[...], r_ref[...], activation,
                           final_log_softmax, f_out).astype(o_ref.dtype)


def _agg_kernel_tiled(a_ref, hl_ref, inv_ref, r_ref, o_ref, acc_ref, *,
                      activation, final_log_softmax, f_out):
    k = pl.program_id(1)

    @pl.when(k == 0)
    def _():
        acc_ref[...] = jnp.zeros_like(acc_ref)

    acc_ref[...] += jnp.dot(a_ref[...], hl_ref[...],
                            preferred_element_type=jnp.float32)

    @pl.when(k == pl.num_programs(1) - 1)
    def _():
        o_ref[...] = _epilogue(acc_ref[...], inv_ref[...], r_ref[...],
                               activation, final_log_softmax,
                               f_out).astype(o_ref.dtype)


def _aggregate(counts, hl, inv_deg, r, *, activation, final_log_softmax,
               f_out, out_dtype):
    n_pad, f_pad_out = hl.shape
    budget, vmem_limit = _vmem_budget_and_limit()
    out_bytes = jnp.dtype(out_dtype).itemsize
    tm, tk, resident = _pick_agg_tiles(n_pad, f_pad_out, out_bytes, budget)

    if resident:
        kern = functools.partial(_agg_kernel_resident, activation=activation,
                                 final_log_softmax=final_log_softmax,
                                 f_out=f_out)
        return pl.pallas_call(
            kern,
            out_shape=jax.ShapeDtypeStruct((n_pad, f_pad_out), out_dtype),
            grid=(n_pad // tm,),
            in_specs=[
                pl.BlockSpec((tm, n_pad), lambda i: (i, 0)),         # C (bf16)
                pl.BlockSpec((n_pad, f_pad_out), lambda i: (0, 0)),  # H_l resident
                pl.BlockSpec((tm, 1), lambda i: (i, 0)),             # 1/deg (f32)
                pl.BlockSpec((tm, f_pad_out), lambda i: (i, 0)),     # R (f32)
            ],
            out_specs=pl.BlockSpec((tm, f_pad_out), lambda i: (i, 0)),
            compiler_params=pltpu.CompilerParams(
                dimension_semantics=("parallel",),
                vmem_limit_bytes=vmem_limit),
        )(counts, hl, inv_deg, r)

    kern = functools.partial(_agg_kernel_tiled, activation=activation,
                             final_log_softmax=final_log_softmax, f_out=f_out)
    return pl.pallas_call(
        kern,
        out_shape=jax.ShapeDtypeStruct((n_pad, f_pad_out), out_dtype),
        grid=(n_pad // tm, n_pad // tk),
        in_specs=[
            pl.BlockSpec((tm, tk), lambda i, k: (i, k)),             # C (bf16)
            pl.BlockSpec((tk, f_pad_out), lambda i, k: (k, 0)),      # H_l (bf16)
            pl.BlockSpec((tm, 1), lambda i, k: (i, 0)),              # 1/deg (f32)
            pl.BlockSpec((tm, f_pad_out), lambda i, k: (i, 0)),      # R (f32)
        ],
        out_specs=pl.BlockSpec((tm, f_pad_out), lambda i, k: (i, 0)),
        scratch_shapes=[pltpu.VMEM((tm, f_pad_out), jnp.float32)],
        compiler_params=pltpu.CompilerParams(
            dimension_semantics=("parallel", "arbitrary"),
            vmem_limit_bytes=vmem_limit),
    )(counts, hl, inv_deg, r)


# ---------------------------------------------------------------------------
# One SAGEConv layer on padded inputs
# ---------------------------------------------------------------------------
def sage_layer(counts, inv_deg, x_pad, w_l, w_r, b_l, *, activation=None,
               final_log_softmax=False, out_dtype=jnp.bfloat16):
    """counts: (Np,Np) bf16 neighbor counts; inv_deg: (Np,1) f32 1/deg.
    x_pad: (Np, Fp_in) bf16 zero-padded features.  Returns (Np, Fp_out)."""
    n_pad, f_pad_in = x_pad.shape
    f_in, f_out = w_l.shape
    f_pad_out = _round_up(f_out, 128)

    # Zero-pad and fuse the two weight matrices once (lane-dense, full MXU).
    # NOTE: padded weight rows MUST stay zero -- with sigmoid activation the
    # padded feature lanes of intermediate h are 0.5, and only the zero rows
    # keep them from contaminating real outputs.
    w_l_p = jnp.zeros((f_pad_in, f_pad_out), jnp.float32).at[:f_in, :f_out].set(w_l)
    w_r_p = jnp.zeros((f_pad_in, f_pad_out), jnp.float32).at[:f_in, :f_out].set(w_r)
    w_cat = jnp.concatenate([w_l_p, w_r_p], axis=1).astype(jnp.bfloat16)
    b_pad = jnp.zeros((1, f_pad_out), jnp.float32).at[:, :f_out].set(b_l)

    hl, r = _fused_linear(x_pad, w_cat, b_pad, f_pad_out)
    return _aggregate(counts, hl, inv_deg, r, activation=activation,
                      final_log_softmax=final_log_softmax, f_out=f_out,
                      out_dtype=out_dtype)


# ---------------------------------------------------------------------------
# Graph preprocessing (hoisted out of the forward pass for static graphs)
# ---------------------------------------------------------------------------
def precompute_graph(edge_index, num_nodes):
    """Dense bf16 neighbor-COUNT matrix + f32 1/deg, padded to the tile grid.

    Counts are small integers (exact in bf16); the 1/deg mean scale is applied
    in f32 inside the aggregation epilogue, so it is not quantized to bf16.
    """
    # TODO(synk): for very large sparse graphs replace the dense N x N counts
    # matrix by a scalar-prefetch gather of neighbor rows instead.
    n_pad = _padded_nodes(num_nodes)
    out_nodes, in_nodes = edge_index[0], edge_index[1]
    src_u = jnp.concatenate([out_nodes, in_nodes])   # message sources
    dst_u = jnp.concatenate([in_nodes, out_nodes])   # message targets
    counts = jnp.zeros((n_pad, n_pad), jnp.float32).at[dst_u, src_u].add(1.0)
    deg = jnp.sum(counts, axis=1, keepdims=True)
    inv_deg = 1.0 / jnp.maximum(deg, 1.0)            # padded/isolated rows: counts row is 0
    return counts.astype(jnp.bfloat16), inv_deg


# ---------------------------------------------------------------------------
# Model: parameters + forward
# ---------------------------------------------------------------------------
def init_modified_sage_params(key, input_dim, hidden_dim, output_dim,
                              num_hidden_layers):
    if num_hidden_layers == 1:
        dims = [(input_dim, output_dim)]
    else:
        dims = ([(input_dim, hidden_dim)]
                + [(hidden_dim, hidden_dim)] * (num_hidden_layers - 2)
                + [(hidden_dim, output_dim)])
    params = []
    for (fi, fo) in dims:
        key, k1, k2, k3 = jax.random.split(key, 4)
        scale = 1.0 / jnp.sqrt(jnp.float32(fi))
        w_l = jax.random.uniform(k1, (fi, fo), jnp.float32, -scale, scale)
        w_r = jax.random.uniform(k2, (fi, fo), jnp.float32, -scale, scale)
        b_l = jax.random.uniform(k3, (1, fo), jnp.float32, -scale, scale)
        params.append((w_l, w_r, b_l))
    return params


@functools.partial(jax.jit, static_argnames=("activation_type",))
def modified_sage_forward(params, x, counts, inv_deg, activation_type="Relu"):
    n, f_in = x.shape
    n_pad = counts.shape[0]
    f_pad_in = _round_up(f_in, 128)

    h = jnp.zeros((n_pad, f_pad_in), jnp.bfloat16).at[:n, :f_in].set(
        x.astype(jnp.bfloat16))
    act = "relu" if activation_type == "Relu" else "sigmoid"
    for (w_l, w_r, b_l) in params[:-1]:
        h = sage_layer(counts, inv_deg, h, w_l, w_r, b_l, activation=act,
                       out_dtype=jnp.bfloat16)
    w_l, w_r, b_l = params[-1]
    h = sage_layer(counts, inv_deg, h, w_l, w_r, b_l, activation=None,
                   final_log_softmax=True, out_dtype=jnp.float32)
    return h[:n, :w_l.shape[1]]


# ---------------------------------------------------------------------------
# Pure-JAX (f32) reference for validation
# ---------------------------------------------------------------------------
def _reference_forward(params, x, edge_index, activation_type):
    n = x.shape[0]
    src, dst = edge_index[0], edge_index[1]
    src_u = jnp.concatenate([src, dst])
    dst_u = jnp.concatenate([dst, src])
    a = jnp.zeros((n, n), jnp.float32).at[dst_u, src_u].add(1.0)
    deg = jnp.sum(a, axis=1, keepdims=True)
    a = a / jnp.maximum(deg, 1.0)
    act = (lambda v: jnp.maximum(v, 0.0)) if activation_type == "Relu" else jax.nn.sigmoid
    h = x
    for (w_l, w_r, b_l) in params[:-1]:
        h = act((a @ h) @ w_l + b_l + h @ w_r)
    w_l, w_r, b_l = params[-1]
    h = (a @ h) @ w_l + b_l + h @ w_r
    return jax.nn.log_softmax(h, axis=1)


if __name__ == "__main__":
    key = jax.random.PRNGKey(0)

    num_nodes = 16
    input_dim = 8
    hidden_dim = 32
    output_dim = 8
    num_hidden_layers = 3
    num_edges = 24

    kx, ke_src, ke_dst, kp = jax.random.split(key, 4)
    x = jax.random.normal(kx, (num_nodes, input_dim), jnp.float32)
    src = jax.random.randint(ke_src, (num_edges,), 0, num_nodes, jnp.int32)
    dst = jax.random.randint(ke_dst, (num_edges,), 0, num_nodes, jnp.int32)
    edge_index = jnp.stack([src, dst], axis=0)  # (2, E) == [out_nodes, in_nodes]

    params = init_modified_sage_params(kp, input_dim, hidden_dim, output_dim,
                                       num_hidden_layers)

    # Static graph: build the aggregation operands once, outside the forward.
    counts, inv_deg = precompute_graph(edge_index, num_nodes)

    out = modified_sage_forward(params, x, counts, inv_deg,
                                activation_type="Relu")
    out = jax.block_until_ready(out)
    assert out.shape == (num_nodes, output_dim)
    # log_softmax rows should (approximately) exp-sum to 1
    assert bool(jnp.all(jnp.abs(jnp.sum(jnp.exp(out), axis=1) - 1.0) < 1e-3))
    # compare against f32 pure-JAX reference (kernel path uses bf16 operands)
    ref = _reference_forward(params, x, edge_index, "Relu")
    max_err = float(jnp.max(jnp.abs(out - ref)))
    assert max_err < 0.1, max_err
    print("KERNEL_OK")
</pallas_src>

<mosaic_0001>
module attributes {stable_mosaic.version = 11 : i64} {
  func.func @_linear_kernel(%arg0: i32, %arg1: memref<128x128xbf16, #tpu.memory_space<vmem>>, %arg2: memref<128x256xbf16, #tpu.memory_space<vmem>>, %arg3: memref<1x128xf32, #tpu.memory_space<vmem>>, %arg4: memref<128x128xbf16, #tpu.memory_space<vmem>>, %arg5: memref<128x128xf32, #tpu.memory_space<vmem>>) attributes {dimension_semantics = [#tpu.dimension_semantics<parallel>], iteration_bounds = array<i64: 1>, scalar_prefetch = 0 : i64, scratch_operands = 0 : i64, tpu.core_type = #tpu.core_type<tc>, window_params = [{transform_indices = @transform_0, window_bounds = array<i64: 128, 128>}, {pipeline_mode = #tpu.pipeline_mode<synchronous>, transform_indices = @transform_1, window_bounds = array<i64: 128, 256>}, {pipeline_mode = #tpu.pipeline_mode<synchronous>, transform_indices = @transform_2, window_bounds = array<i64: 1, 128>}, {transform_indices = @transform_3, window_bounds = array<i64: 128, 128>}, {transform_indices = @transform_4, window_bounds = array<i64: 128, 128>}]} {
    %c0 = arith.constant 0 : index
    %c0_0 = arith.constant 0 : index
    %0 = vector.load %arg1[%c0, %c0_0] : memref<128x128xbf16, #tpu.memory_space<vmem>>, vector<128x128xbf16>
    %c0_1 = arith.constant 0 : index
    %c0_2 = arith.constant 0 : index
    %1 = vector.load %arg2[%c0_1, %c0_2] : memref<128x256xbf16, #tpu.memory_space<vmem>>, vector<128x256xbf16>
    %cst = arith.constant dense<0.000000e+00> : vector<128x256xf32>
    %2 = tpu.matmul %0, %1, %cst {dimension_numbers = #tpu.dot_dimension_numbers<[1], [0], [0], [1], [0, 0, 1, 1], [], []>} : vector<128x128xbf16>, vector<128x256xbf16>, vector<128x256xf32> -> vector<128x256xf32>
    %3 = vector.extract_strided_slice %2 {offsets = [0, 0], sizes = [128, 128], strides = [1, 1]} : vector<128x256xf32> to vector<128x128xf32>
    %4 = arith.truncf %3 : vector<128x128xf32> to vector<128x128xbf16>
    %c0_3 = arith.constant 0 : index
    %c0_4 = arith.constant 0 : index
    %5 = vector.load %arg4[%c0_3, %c0_4] : memref<128x128xbf16, #tpu.memory_space<vmem>>, vector<128x128xbf16>
    tpu.vector_store %arg4[%c0_3, %c0_4], %4 {strides = array<i32>} : memref<128x128xbf16, #tpu.memory_space<vmem>>, vector<128x128xbf16>,
    %6 = vector.extract_strided_slice %2 {offsets = [0, 128], sizes = [128, 128], strides = [1, 1]} : vector<128x256xf32> to vector<128x128xf32>
    %c0_5 = arith.constant 0 : index
    %c0_6 = arith.constant 0 : index
    %7 = vector.load %arg3[%c0_5, %c0_6] : memref<1x128xf32, #tpu.memory_space<vmem>>, vector<1x128xf32>
    %8 = vector.broadcast %7 : vector<1x128xf32> to vector<128x128xf32>
    %9 = arith.addf %6, %8 : vector<128x128xf32>
    %c0_7 = arith.constant 0 : index
    %c0_8 = arith.constant 0 : index
    %10 = vector.load %arg5[%c0_7, %c0_8] : memref<128x128xf32, #tpu.memory_space<vmem>>, vector<128x128xf32>
    tpu.vector_store %arg5[%c0_7, %c0_8], %9 {strides = array<i32>} : memref<128x128xf32, #tpu.memory_space<vmem>>, vector<128x128xf32>,
    return
  }
  func.func @transform_0(%arg0: i32) -> (i32, i32) {
    %c0_i32 = arith.constant 0 : i32
    %c0_i32_0 = arith.constant 0 : i32
    return %arg0, %c0_i32 : i32, i32
  }
  func.func @transform_1(%arg0: i32) -> (i32, i32) {
    %c0_i32 = arith.constant 0 : i32
    %c0_i32_0 = arith.constant 0 : i32
    %c0_i32_1 = arith.constant 0 : i32
    return %c0_i32, %c0_i32_0 : i32, i32
  }
  func.func @transform_2(%arg0: i32) -> (i32, i32) {
    %c0_i32 = arith.constant 0 : i32
    %c0_i32_0 = arith.constant 0 : i32
    %c0_i32_1 = arith.constant 0 : i32
    return %c0_i32, %c0_i32_0 : i32, i32
  }
  func.func @transform_3(%arg0: i32) -> (i32, i32) {
    %c0_i32 = arith.constant 0 : i32
    %c0_i32_0 = arith.constant 0 : i32
    return %arg0, %c0_i32 : i32, i32
  }
  func.func @transform_4(%arg0: i32) -> (i32, i32) {
    %c0_i32 = arith.constant 0 : i32
    %c0_i32_0 = arith.constant 0 : i32
    return %arg0, %c0_i32 : i32, i32
  }
}

module attributes {stable_mosaic.version = 11 : i64} {
  func.func @_agg_kernel_resident(%arg0: i32, %arg1: memref<128x128xbf16, #tpu.memory_space<vmem>>, %arg2: memref<128x128xbf16, #tpu.memory_space<vmem>>, %arg3: memref<128x1xf32, #tpu.memory_space<vmem>>, %arg4: memref<128x128xf32, #tpu.memory_space<vmem>>, %arg5: memref<128x128xbf16, #tpu.memory_space<vmem>>) attributes {dimension_semantics = [#tpu.dimension_semantics<parallel>], iteration_bounds = array<i64: 1>, scalar_prefetch = 0 : i64, scratch_operands = 0 : i64, tpu.core_type = #tpu.core_type<tc>, window_params = [{transform_indices = @transform_0, window_bounds = array<i64: 128, 128>}, {pipeline_mode = #tpu.pipeline_mode<synchronous>, transform_indices = @transform_1, window_bounds = array<i64: 128, 128>}, {transform_indices = @transform_2, window_bounds = array<i64: 128, 1>}, {transform_indices = @transform_3, window_bounds = array<i64: 128, 128>}, {transform_indices = @transform_4, window_bounds = array<i64: 128, 128>}]} {
    %c0 = arith.constant 0 : index
    %c0_0 = arith.constant 0 : index
    %0 = vector.load %arg1[%c0, %c0_0] : memref<128x128xbf16, #tpu.memory_space<vmem>>, vector<128x128xbf16>
    %c0_1 = arith.constant 0 : index
    %c0_2 = arith.constant 0 : index
    %1 = vector.load %arg2[%c0_1, %c0_2] : memref<128x128xbf16, #tpu.memory_space<vmem>>, vector<128x128xbf16>
    %cst = arith.constant dense<0.000000e+00> : vector<128x128xf32>
    %2 = tpu.matmul %0, %1, %cst {dimension_numbers = #tpu.dot_dimension_numbers<[1], [0], [0], [1], [0, 0, 1, 1], [], []>} : vector<128x128xbf16>, vector<128x128xbf16>, vector<128x128xf32> -> vector<128x128xf32>
    %c0_3 = arith.constant 0 : index
    %c0_4 = arith.constant 0 : index
    %3 = vector.load %arg3[%c0_3, %c0_4] : memref<128x1xf32, #tpu.memory_space<vmem>>, vector<128x1xf32>
    %c0_5 = arith.constant 0 : index
    %c0_6 = arith.constant 0 : index
    %4 = vector.load %arg4[%c0_5, %c0_6] : memref<128x128xf32, #tpu.memory_space<vmem>>, vector<128x128xf32>
    %5 = vector.broadcast %3 : vector<128x1xf32> to vector<128x128xf32>
    %6 = arith.mulf %5, %2 : vector<128x128xf32>
    %7 = arith.addf %6, %4 : vector<128x128xf32>
    %cst_7 = arith.constant 0.000000e+00 : f32
    %8 = vector.broadcast %cst_7 : f32 to vector<128x128xf32>
    %9 = arith.maximumf %7, %8 : vector<128x128xf32>
    %10 = arith.truncf %9 : vector<128x128xf32> to vector<128x128xbf16>
    %c0_8 = arith.constant 0 : index
    %c0_9 = arith.constant 0 : index
    %11 = vector.load %arg5[%c0_8, %c0_9] : memref<128x128xbf16, #tpu.memory_space<vmem>>, vector<128x128xbf16>
    tpu.vector_store %arg5[%c0_8, %c0_9], %10 {strides = array<i32>} : memref<128x128xbf16, #tpu.memory_space<vmem>>, vector<128x128xbf16>,
    return
  }
  func.func @transform_0(%arg0: i32) -> (i32, i32) {
    %c0_i32 = arith.constant 0 : i32
    %c0_i32_0 = arith.constant 0 : i32
    return %arg0, %c0_i32 : i32, i32
  }
  func.func @transform_1(%arg0: i32) -> (i32, i32) {
    %c0_i32 = arith.constant 0 : i32
    %c0_i32_0 = arith.constant 0 : i32
    %c0_i32_1 = arith.constant 0 : i32
    return %c0_i32, %c0_i32_0 : i32, i32
  }
  func.func @transform_2(%arg0: i32) -> (i32, i32) {
    %c0_i32 = arith.constant 0 : i32
    %c0_i32_0 = arith.constant 0 : i32
    return %arg0, %c0_i32 : i32, i32
  }
  func.func @transform_3(%arg0: i32) -> (i32, i32) {
    %c0_i32 = arith.constant 0 : i32
    %c0_i32_0 = arith.constant 0 : i32
    return %arg0, %c0_i32 : i32, i32
  }
  func.func @transform_4(%arg0: i32) -> (i32, i32) {
    %c0_i32 = arith.constant 0 : i32
    %c0_i32_0 = arith.constant 0 : i32
    return %arg0, %c0_i32 : i32, i32
  }
}

module attributes {stable_mosaic.version = 11 : i64} {
  func.func @_agg_kernel_resident(%arg0: i32, %arg1: memref<128x128xbf16, #tpu.memory_space<vmem>>, %arg2: memref<128x128xbf16, #tpu.memory_space<vmem>>, %arg3: memref<128x1xf32, #tpu.memory_space<vmem>>, %arg4: memref<128x128xf32, #tpu.memory_space<vmem>>, %arg5: memref<128x128xf32, #tpu.memory_space<vmem>>) attributes {dimension_semantics = [#tpu.dimension_semantics<parallel>], iteration_bounds = array<i64: 1>, scalar_prefetch = 0 : i64, scratch_operands = 0 : i64, tpu.core_type = #tpu.core_type<tc>, window_params = [{transform_indices = @transform_0, window_bounds = array<i64: 128, 128>}, {pipeline_mode = #tpu.pipeline_mode<synchronous>, transform_indices = @transform_1, window_bounds = array<i64: 128, 128>}, {transform_indices = @transform_2, window_bounds = array<i64: 128, 1>}, {transform_indices = @transform_3, window_bounds = array<i64: 128, 128>}, {transform_indices = @transform_4, window_bounds = array<i64: 128, 128>}]} {
    %c0 = arith.constant 0 : index
    %c0_0 = arith.constant 0 : index
    %0 = vector.load %arg1[%c0, %c0_0] : memref<128x128xbf16, #tpu.memory_space<vmem>>, vector<128x128xbf16>
    %c0_1 = arith.constant 0 : index
    %c0_2 = arith.constant 0 : index
    %1 = vector.load %arg2[%c0_1, %c0_2] : memref<128x128xbf16, #tpu.memory_space<vmem>>, vector<128x128xbf16>
    %cst = arith.constant dense<0.000000e+00> : vector<128x128xf32>
    %2 = tpu.matmul %0, %1, %cst {dimension_numbers = #tpu.dot_dimension_numbers<[1], [0], [0], [1], [0, 0, 1, 1], [], []>} : vector<128x128xbf16>, vector<128x128xbf16>, vector<128x128xf32> -> vector<128x128xf32>
    %c0_3 = arith.constant 0 : index
    %c0_4 = arith.constant 0 : index
    %3 = vector.load %arg3[%c0_3, %c0_4] : memref<128x1xf32, #tpu.memory_space<vmem>>, vector<128x1xf32>
    %c0_5 = arith.constant 0 : index
    %c0_6 = arith.constant 0 : index
    %4 = vector.load %arg4[%c0_5, %c0_6] : memref<128x128xf32, #tpu.memory_space<vmem>>, vector<128x128xf32>
    %5 = vector.broadcast %3 : vector<128x1xf32> to vector<128x128xf32>
    %6 = arith.mulf %5, %2 : vector<128x128xf32>
    %7 = arith.addf %6, %4 : vector<128x128xf32>
    %8 = tpu.iota {dimensions = array<i32: 1>} : vector<128x128xi32>
    %c8_i32 = arith.constant 8 : i32
    %9 = vector.broadcast %c8_i32 : i32 to vector<128x128xi32>
    %10 = arith.cmpi slt, %8, %9 : vector<128x128xi32>
    %cst_7 = arith.constant -1.000000e+30 : f32
    %11 = vector.broadcast %cst_7 : f32 to vector<128x128xf32>
    %12 = arith.select %10, %7, %11 : vector<128x128xi1>, vector<128x128xf32>
    %cst_8 = arith.constant dense<0xFF800000> : vector<128xf32>
    %13 = vector.multi_reduction <maximumf>, %12, %cst_8 [1] : vector<128x128xf32> to vector<128xf32>
    %14 = vector.shape_cast %13 : vector<128xf32> to vector<128x1xf32>
    %15 = vector.broadcast %14 : vector<128x1xf32> to vector<128x128xf32>
    %16 = arith.subf %12, %15 : vector<128x128xf32>
    %17 = math.exp %16 : vector<128x128xf32>
    %cst_9 = arith.constant dense<0.000000e+00> : vector<128xf32>
    %18 = vector.multi_reduction <add>, %17, %cst_9 [1] : vector<128x128xf32> to vector<128xf32>
    %19 = vector.shape_cast %18 : vector<128xf32> to vector<128x1xf32>
    %20 = math.log %19 : vector<128x1xf32>
    %21 = vector.broadcast %20 : vector<128x1xf32> to vector<128x128xf32>
    %22 = arith.subf %16, %21 : vector<128x128xf32>
    %c0_10 = arith.constant 0 : index
    %c0_11 = arith.constant 0 : index
    %23 = vector.load %arg5[%c0_10, %c0_11] : memref<128x128xf32, #tpu.memory_space<vmem>>, vector<128x128xf32>
    tpu.vector_store %arg5[%c0_10, %c0_11], %22 {strides = array<i32>} : memref<128x128xf32, #tpu.memory_space<vmem>>, vector<128x128xf32>,
    return
  }
  func.func @transform_0(%arg0: i32) -> (i32, i32) {
    %c0_i32 = arith.constant 0 : i32
    %c0_i32_0 = arith.constant 0 : i32
    return %arg0, %c0_i32 : i32, i32
  }
  func.func @transform_1(%arg0: i32) -> (i32, i32) {
    %c0_i32 = arith.constant 0 : i32
    %c0_i32_0 = arith.constant 0 : i32
    %c0_i32_1 = arith.constant 0 : i32
    return %c0_i32, %c0_i32_0 : i32, i32
  }
  func.func @transform_2(%arg0: i32) -> (i32, i32) {
    %c0_i32 = arith.constant 0 : i32
    %c0_i32_0 = arith.constant 0 : i32
    return %arg0, %c0_i32 : i32, i32
  }
  func.func @transform_3(%arg0: i32) -> (i32, i32) {
    %c0_i32 = arith.constant 0 : i32
    %c0_i32_0 = arith.constant 0 : i32
    return %arg0, %c0_i32 : i32, i32
  }
  func.func @transform_4(%arg0: i32) -> (i32, i32) {
    %c0_i32 = arith.constant 0 : i32
    %c0_i32_0 = arith.constant 0 : i32
    return %arg0, %c0_i32 : i32, i32
  }
}

</mosaic_0001>

<bundles_post_ra>
// kernel: modified_sage_forward.6
= control target key start
LH: loop header
LB: loop body
LE: loop exit
PB: predicated region body
PF: predicated region fallthrough
CT: control target
= control target key end

     0   :  { %v570_v1 = vmov 0   ;;  %s769_s1 = inlined_call_operand.vmem [shape: bf16[128,256], index: 1, kind: input, shape index: {}]   ;;  %s770_s0 = inlined_call_operand.vmem [shape: bf16[128,128], index: 0, kind: input, shape index: {}]   ;;  %s771_s2 = inlined_call_operand.vmem [shape: f32[1,128], index: 2, kind: input, shape index: {}]   ;;  %s772_s4 = inlined_call_operand.vmem [shape: f32[128,128], index: 4, kind: output, shape index: {1}]   ;;  %s773_s3 = inlined_call_operand.vmem [shape: bf16[128,128], index: 3, kind: output, shape index: {0}]  }
   0x1   :  { %v538_v0 = vld [vmem:[%s769_s1 + $0x4] ss:$8 sps:$4 sm:$0xff]   ;;  %209 = vmatprep.mubr.bf16.mxu0 %v570_v1  ;;  %249 = vmatprep.mubr.bf16.mxu1 %v570_v1  ;;  %v540_v2 = vld [vmem:[%s769_s1] ss:$8 sps:$4 sm:$0xff]   ;;  %v541_v3 = vld [vmem:[%s769_s1 + $0x14] ss:$8 sps:$4 sm:$0xff]  }
   0x2   :  { %177 = vmatprep.subr.bf16.mxu0 %v538_v0  ;;  %521 = vmatprep.subr.bf16.mxu1 %v538_v0  ;;  %v543_v4 = vld [vmem:[%s769_s1 + $0x10] ss:$8 sps:$4 sm:$0xff]   ;;  %v544_v5 = vld [vmem:[%s769_s1 + $0x24] ss:$8 sps:$4 sm:$0xff]   ;;  %v546_v6 = vld [vmem:[%s769_s1 + $0x20] ss:$8 sps:$4 sm:$0xff]  }
   0x3   :  { %178 = vmatpush1.bf16.msra.mxu0 %v540_v2  ;;  %529 = vmatpush1.bf16.msra.mxu1 %v540_v2  ;;  %v547_v7 = vld [vmem:[%s769_s1 + $0x34] ss:$8 sps:$4 sm:$0xff]   ;;  %v549_v8 = vld [vmem:[%s769_s1 + $0x30] ss:$8 sps:$4 sm:$0xff]   ;;  %v550_v9 = vld [vmem:[%s769_s1 + $0x44] ss:$8 sps:$4 sm:$0xff]  }
   0x4   :  { %179 = vmatprep.subr.bf16.mxu0 %v541_v3  ;;  %522 = vmatprep.subr.bf16.mxu1 %v541_v3  ;;  %v552_v10 = vld [vmem:[%s769_s1 + $0x40] ss:$8 sps:$4 sm:$0xff]   ;;  %v553_v11 = vld [vmem:[%s769_s1 + $0x54] ss:$8 sps:$4 sm:$0xff]   ;;  %v555_v12 = vld [vmem:[%s769_s1 + $0x50] ss:$8 sps:$4 sm:$0xff]  }
   0x5   :  { %v556_v13 = vld [vmem:[%s769_s1 + $0x64] ss:$8 sps:$4 sm:$0xff]   ;;  %v558_v14 = vld [vmem:[%s769_s1 + $0x60] ss:$8 sps:$4 sm:$0xff]   ;;  %v559_v15 = vld [vmem:[%s769_s1 + $0x74] ss:$8 sps:$4 sm:$0xff]  }
   0x6   :  { %v561_v16 = vld [vmem:[%s769_s1 + $0x70] ss:$8 sps:$4 sm:$0xff]   ;;  %v562_v17 = vld [vmem:[%s770_s0] sm:$0xff]   ;;  %v564_v19 = vld [vmem:[%s770_s0 + $0x8] sm:$0xff]  }
   0x7   :  { %180 = vmatpush1.bf16.msra.mxu0 %v543_v4  ;;  %530 = vmatpush1.bf16.msra.mxu1 %v543_v4  ;;  %v563_v18 = vld [vmem:[%s770_s0 + $0x20] sm:$0xff]   ;;  %v565_v20 = vld [vmem:[%s770_s0 + $0x28] sm:$0xff]   ;;  %v566_v21 = vld [vmem:[%s770_s0 + $0x10] sm:$0xff]  }
   0x8   :  { %181 = vmatprep.subr.bf16.mxu0 %v544_v5  ;;  %523 = vmatprep.subr.bf16.mxu1 %v544_v5  ;;  %v567_v22 = vld [vmem:[%s770_s0 + $0x30] sm:$0xff]   ;;  %v568_v23 = vld [vmem:[%s770_s0 + $0x18] sm:$0xff]   ;;  %v679_v25 = vld [vmem:[%s771_s2] ss:$0 sm:$0xff] }
   0x9   :  { %v569_v24 = vld [vmem:[%s770_s0 + $0x38] sm:$0xff]  }
   0xb   :  { %182 = vmatpush1.bf16.msra.mxu0 %v546_v6  ;;  %531 = vmatpush1.bf16.msra.mxu1 %v546_v6 }
   0xc   :  { %183 = vmatprep.subr.bf16.mxu0 %v547_v7  ;;  %524 = vmatprep.subr.bf16.mxu1 %v547_v7 }
   0xf   :  { %184 = vmatpush1.bf16.msra.mxu0 %v549_v8  ;;  %532 = vmatpush1.bf16.msra.mxu1 %v549_v8 }
  0x10   :  { %185 = vmatprep.subr.bf16.mxu0 %v550_v9  ;;  %525 = vmatprep.subr.bf16.mxu1 %v550_v9 }
  0x13   :  { %186 = vmatpush1.bf16.msra.mxu0 %v552_v10  ;;  %533 = vmatpush1.bf16.msra.mxu1 %v552_v10 }
  0x14   :  { %187 = vmatprep.subr.bf16.mxu0 %v553_v11  ;;  %526 = vmatprep.subr.bf16.mxu1 %v553_v11 }
  0x17   :  { %188 = vmatpush1.bf16.msra.mxu0 %v555_v12  ;;  %534 = vmatpush1.bf16.msra.mxu1 %v555_v12 }
  0x18   :  { %189 = vmatprep.subr.bf16.mxu0 %v556_v13  ;;  %527 = vmatprep.subr.bf16.mxu1 %v556_v13 }
  0x1b   :  { %190 = vmatpush1.bf16.msra.mxu0 %v558_v14  ;;  %535 = vmatpush1.bf16.msra.mxu1 %v558_v14 }
  0x1c   :  { %191 = vmatprep.subr.bf16.mxu0 %v559_v15  ;;  %528 = vmatprep.subr.bf16.mxu1 %v559_v15 }
  0x1f   :  { %192 = vmatpush1.bf16.msra.mxu0 %v561_v16  ;;  %536 = vmatpush1.bf16.msra.mxu1 %v561_v16 }
  0x22   :  { %210 = vmatmul.mubr.bf16.vlgmr.msra.gmra.mrb[0].mxu0 %v562_v17  ;;  %250 = vmatmul.mubr.bf16.vlgmr.msra.gmra.mrb[0].mxu1 %v563_v18 }
  0x23   :  { %219 = vmatprep.mubr.bf16.mxu0 %v570_v1  ;;  %259 = vmatprep.mubr.bf16.mxu1 %v570_v1 }
  0x2a   :  { %220 = vmatmul.mubr.bf16.gmra.mrb[4].mxu0 %v564_v19  ;;  %260 = vmatmul.mubr.bf16.gmra.mrb[4].mxu1 %v565_v20 }
  0x2b   :  { %229 = vmatprep.mubr.bf16.mxu0 %v570_v1  ;;  %269 = vmatprep.mubr.bf16.mxu1 %v570_v1 }
  0x32   :  { %230 = vmatmul.mubr.bf16.gmra.mrb[8].mxu0 %v566_v21  ;;  %270 = vmatmul.mubr.bf16.gmra.mrb[8].mxu1 %v567_v22 }
  0x33   :  { %239 = vmatprep.mubr.bf16.mxu0 %v570_v1  ;;  %279 = vmatprep.mubr.bf16.mxu1 %v570_v1 }
  0x3a   :  { %240 = vmatmul.mubr.bf16.gmra.mrb[12].mxu0 %v568_v23  ;;  %280 = vmatmul.mubr.bf16.gmra.mrb[12].mxu1 %v569_v24 }
  0xf5   :  { %v211_v26 = vpop.f32.mrb[0].mxu0  ;;  %v251_v27 = vpop.f32.mrb[0].mxu1 }
  0xf6   :  { %v213_v28 = vpop.f32.mrb[1].mxu0  ;;  %v253_v29 = vpop.f32.mrb[1].mxu1 }
  0xf7   :  { %v377_v30 = vadd.f32 %v679_v25, %v213_v28  ;;  %v385_v31 = vadd.f32 %v679_v25, %v253_v29  ;;  %v215_v32 = vpop.f32.mrb[2].mxu0  ;;  %v255_v33 = vpop.f32.mrb[2].mxu1 }
  0xf8   :  { %v477_v34 = vpack.c.bf16 %v215_v32, %v211_v26  ;;  %v497_v35 = vpack.c.bf16 %v255_v33, %v251_v27  ;;  %v217_v36 = vpop.f32.mrb[3].mxu0  ;;  %v257_v37 = vpop.f32.mrb[3].mxu1 }
  0xf9   :  { %393 = vst [vmem:[%s772_s4] sm:$0xff] %v377_v30  ;;  %401 = vst [vmem:[%s772_s4 + $0x40] sm:$0xff] %v385_v31  ;;  %v378_v38 = vadd.f32 %v679_v25, %v217_v36  ;;  %v386_v39 = vadd.f32 %v679_v25, %v257_v37 }
  0xfa   :  { %478 = vst [vmem:[%s773_s3] sm:$0xff] %v477_v34   ;;  %517 = vst [vmem:[%s773_s3 + $0x20] sm:$0xff] %v497_v35  }
  0xfb   :  { %394 = vst [vmem:[%s772_s4 + $0x8] sm:$0xff] %v378_v38  ;;  %402 = vst [vmem:[%s772_s4 + $0x48] sm:$0xff] %v386_v39 }
  0xfd   :  { %v221_v40 = vpop.f32.mrb[4].mxu0  ;;  %v261_v41 = vpop.f32.mrb[4].mxu1 }
  0xfe   :  { %v223_v42 = vpop.f32.mrb[5].mxu0  ;;  %v263_v43 = vpop.f32.mrb[5].mxu1 }
  0xff   :  { %v379_v44 = vadd.f32 %v679_v25, %v223_v42  ;;  %v387_v45 = vadd.f32 %v679_v25, %v263_v43  ;;  %v225_v46 = vpop.f32.mrb[6].mxu0  ;;  %v265_v47 = vpop.f32.mrb[6].mxu1 }
 0x100   :  { %v482_v48 = vpack.c.bf16 %v225_v46, %v221_v40  ;;  %v502_v49 = vpack.c.bf16 %v265_v47, %v261_v41  ;;  %v227_v50 = vpop.f32.mrb[7].mxu0  ;;  %v267_v51 = vpop.f32.mrb[7].mxu1 }
 0x101   :  { %395 = vst [vmem:[%s772_s4 + $0x10] sm:$0xff] %v379_v44  ;;  %403 = vst [vmem:[%s772_s4 + $0x50] sm:$0xff] %v387_v45  ;;  %v380_v52 = vadd.f32 %v679_v25, %v227_v50  ;;  %v388_v53 = vadd.f32 %v679_v25, %v267_v51 }
 0x102   :  { %514 = vst [vmem:[%s773_s3 + $0x8] sm:$0xff] %v482_v48   ;;  %518 = vst [vmem:[%s773_s3 + $0x28] sm:$0xff] %v502_v49  }
 0x103   :  { %396 = vst [vmem:[%s772_s4 + $0x18] sm:$0xff] %v380_v52  ;;  %404 = vst [vmem:[%s772_s4 + $0x58] sm:$0xff] %v388_v53 }
 0x105   :  { %v231_v54 = vpop.f32.mrb[8].mxu0  ;;  %v271_v55 = vpop.f32.mrb[8].mxu1 }
 0x106   :  { %v233_v56 = vpop.f32.mrb[9].mxu0  ;;  %v273_v57 = vpop.f32.mrb[9].mxu1 }
 0x107   :  { %v381_v58 = vadd.f32 %v679_v25, %v233_v56  ;;  %v389_v59 = vadd.f32 %v679_v25, %v273_v57  ;;  %v235_v60 = vpop.f32.mrb[10].mxu0  ;;  %v275_v61 = vpop.f32.mrb[10].mxu1 }
 0x108   :  { %v487_v62 = vpack.c.bf16 %v235_v60, %v231_v54  ;;  %v507_v63 = vpack.c.bf16 %v275_v61, %v271_v55  ;;  %v237_v0 = vpop.f32.mrb[11].mxu0  ;;  %v277_v1 = vpop.f32.mrb[11].mxu1 }
 0x109   :  { %397 = vst [vmem:[%s772_s4 + $0x20] sm:$0xff] %v381_v58  ;;  %405 = vst [vmem:[%s772_s4 + $0x60] sm:$0xff] %v389_v59  ;;  %v382_v2 = vadd.f32 %v679_v25, %v237_v0  ;;  %v390_v3 = vadd.f32 %v679_v25, %v277_v1 }
 0x10a   :  { %515 = vst [vmem:[%s773_s3 + $0x10] sm:$0xff] %v487_v62   ;;  %519 = vst [vmem:[%s773_s3 + $0x30] sm:$0xff] %v507_v63  }
 0x10b   :  { %398 = vst [vmem:[%s772_s4 + $0x28] sm:$0xff] %v382_v2  ;;  %406 = vst [vmem:[%s772_s4 + $0x68] sm:$0xff] %v390_v3 }
 0x10d   :  { %v241_v4 = vpop.f32.mrb[12].mxu0  ;;  %v281_v5 = vpop.f32.mrb[12].mxu1 }
 0x10e   :  { %v243_v6 = vpop.f32.mrb[13].mxu0  ;;  %v283_v7 = vpop.f32.mrb[13].mxu1 }
 0x10f   :  { %v383_v8 = vadd.f32 %v679_v25, %v243_v6  ;;  %v391_v9 = vadd.f32 %v679_v25, %v283_v7  ;;  %v245_v10 = vpop.f32.mrb[14].mxu0  ;;  %v285_v11 = vpop.f32.mrb[14].mxu1 }
 0x110   :  { %v492_v12 = vpack.c.bf16 %v245_v10, %v241_v4  ;;  %v512_v13 = vpack.c.bf16 %v285_v11, %v281_v5  ;;  %v247_v14 = vpop.f32.mrb[15].mxu0  ;;  %v287_v15 = vpop.f32.mrb[15].mxu1 }
 0x111   :  { %399 = vst [vmem:[%s772_s4 + $0x30] sm:$0xff] %v383_v8  ;;  %407 = vst [vmem:[%s772_s4 + $0x70] sm:$0xff] %v391_v9  ;;  %v384_v16 = vadd.f32 %v679_v25, %v247_v14  ;;  %v392_v17 = vadd.f32 %v679_v25, %v287_v15 }
 0x112   :  { %516 = vst [vmem:[%s773_s3 + $0x18] sm:$0xff] %v492_v12   ;;  %520 = vst [vmem:[%s773_s3 + $0x38] sm:$0xff] %v512_v13  }
 0x113   :  { %400 = vst [vmem:[%s772_s4 + $0x38] sm:$0xff] %v384_v16  ;;  %408 = vst [vmem:[%s772_s4 + $0x78] sm:$0xff] %v392_v17 }

// kernel: modified_sage_forward.7
= control target key start
LH: loop header
LB: loop body
LE: loop exit
PB: predicated region body
PF: predicated region fallthrough
CT: control target
= control target key end

     0   :  { %v665_v1 = vmov 0   ;;  %s871_s1 = inlined_call_operand.vmem [shape: bf16[128,128], index: 1, kind: input, shape index: {}]   ;;  %s872_s0 = inlined_call_operand.vmem [shape: bf16[128,128], index: 0, kind: input, shape index: {}]   ;;  %s873_s2 = inlined_call_operand.vmem [shape: f32[128,1], index: 2, kind: input, shape index: {}]   ;;  %s874_s3 = inlined_call_operand.vmem [shape: f32[128,128], index: 3, kind: input, shape index: {}]   ;;  %s875_s4 = inlined_call_operand.vmem [shape: bf16[128,128], index: 4, kind: output, shape index: {}]  }
   0x1   :  { %v649_v0 = vld [vmem:[%s871_s1] sm:$0xff]   ;;  %648 = vset.pattern.permute.xlu1 %v665_v1  ;;  %647 = vset.pattern.permute.xlu0 %v665_v1  ;;  %v650_v2 = vld [vmem:[%s871_s1 + $0x8] sm:$0xff]   ;;  %v651_v3 = vld [vmem:[%s871_s1 + $0x10] sm:$0xff]  }
   0x2   :  { %598 = vmatprep.subr.bf16.mxu0 %v649_v0  ;;  %630 = vmatprep.subr.bf16.mxu1 %v649_v0  ;;  %v652_v4 = vld [vmem:[%s871_s1 + $0x18] sm:$0xff]   ;;  %v657_v5 = vld [vmem:[%s872_s0] sm:$0xff]   ;;  %v654_v8 = vld [vmem:[%s871_s1 + $0x28] sm:$0xff]  }
   0x3   :  { %599 = vmatpush3.bf16.msra.mxu0 %v649_v0  ;;  %638 = vmatpush3.bf16.msra.mxu1 %v649_v0  ;;  %v658_v6 = vld [vmem:[%s872_s0 + $0x20] sm:$0xff]   ;;  %v245_v9 = vld [vmem:[%s873_s2 + $0x10] sm:$0xff]  ;;  %v246_v11 = vld [vmem:[%s873_s2 + $0x18] sm:$0xff] }
   0x4   :  { %600 = vmatprep.subr.bf16.mxu0 %v650_v2  ;;  %631 = vmatprep.subr.bf16.mxu1 %v650_v2  ;;  %v653_v7 = vld [vmem:[%s871_s1 + $0x20] sm:$0xff]   ;;  %v244_v12 = vld [vmem:[%s873_s2 + $0x8] sm:$0xff]  ;;  %v655_v13 = vld [vmem:[%s871_s1 + $0x30] sm:$0xff]  }
   0x5   :  { %614 = vmatprep.mubr.bf16.mxu0 %v657_v5  ;;  %622 = vmatprep.mubr.bf16.mxu1 %v658_v6  ;;  %v243_v10 = vld [vmem:[%s873_s2] sm:$0xff]  ;;  %v248_v14 = vld [vmem:[%s873_s2 + $0x28] sm:$0xff]  ;;  %v656_v16 = vld [vmem:[%s871_s1 + $0x38] sm:$0xff]  }
   0x6   :  { %287 = vperm.xlu1 %648, %v245_v9   ;;  %277 = vperm.xlu0 %647, %v243_v10   ;;  %v247_v15 = vld [vmem:[%s873_s2 + $0x20] sm:$0xff]  ;;  %v250_v17 = vld [vmem:[%s873_s2 + $0x38] sm:$0xff]  ;;  %v249_v18 = vld [vmem:[%s873_s2 + $0x30] sm:$0xff] }
   0x7   :  { %601 = vmatpush3.bf16.msra.mxu0 %v650_v2  ;;  %639 = vmatpush3.bf16.msra.mxu1 %v650_v2  ;;  %v659_v19 = vld [vmem:[%s872_s0 + $0x8] sm:$0xff]   ;;  %v251_v22 = vld [vmem:[%s873_s2 + $0x40] sm:$0xff]  ;;  %v661_v23 = vld [vmem:[%s872_s0 + $0x10] sm:$0xff]  }
   0x8   :  { %602 = vmatprep.subr.bf16.mxu0 %v651_v3  ;;  %632 = vmatprep.subr.bf16.mxu1 %v651_v3  ;;  %v660_v20 = vld [vmem:[%s872_s0 + $0x28] sm:$0xff]   ;;  %v662_v24 = vld [vmem:[%s872_s0 + $0x30] sm:$0xff]   ;;  %v254_v25 = vld [vmem:[%s873_s2 + $0x58] sm:$0xff] }
   0x9   :  { %v252_v21 = vld [vmem:[%s873_s2 + $0x48] sm:$0xff]  ;;  %v253_v26 = vld [vmem:[%s873_s2 + $0x50] sm:$0xff]  ;;  %v663_v27 = vld [vmem:[%s872_s0 + $0x18] sm:$0xff]  }
   0xa   :  { %292 = vperm.xlu1 %648, %v246_v11   ;;  %282 = vperm.xlu0 %647, %v244_v12   ;;  %v664_v28 = vld [vmem:[%s872_s0 + $0x38] sm:$0xff]   ;;  %v256_v29 = vld [vmem:[%s873_s2 + $0x68] sm:$0xff]  ;;  %v255_v30 = vld [vmem:[%s873_s2 + $0x60] sm:$0xff] }
   0xb   :  { %603 = vmatpush3.bf16.msra.mxu0 %v651_v3  ;;  %640 = vmatpush3.bf16.msra.mxu1 %v651_v3  ;;  %v258_v31 = vld [vmem:[%s873_s2 + $0x78] sm:$0xff]  ;;  %v257_v32 = vld [vmem:[%s873_s2 + $0x70] sm:$0xff]  ;;  %v259_v54 = vld [vmem:[%s874_s3] sm:$0xff] }
   0xc   :  { %604 = vmatprep.subr.bf16.mxu0 %v652_v4  ;;  %633 = vmatprep.subr.bf16.mxu1 %v652_v4  ;;  %v261_v48 = vld [vmem:[%s874_s3 + $0x10] sm:$0xff]  ;;  %v267_v56 = vld [vmem:[%s874_s3 + $0x40] sm:$0xff]  ;;  %v262_v60 = vld [vmem:[%s874_s3 + $0x18] sm:$0xff] }
   0xd   :  { %v269_v50 = vld [vmem:[%s874_s3 + $0x50] sm:$0xff]  ;;  %v270_v62 = vld [vmem:[%s874_s3 + $0x58] sm:$0xff]  ;;  %v268_v6 = vld [vmem:[%s874_s3 + $0x48] sm:$0xff] }
   0xe   :  { %302 = vperm.xlu1 %648, %v248_v14   ;;  %297 = vperm.xlu0 %647, %v247_v15  }
   0xf   :  { %605 = vmatpush3.bf16.msra.mxu0 %v652_v4  ;;  %641 = vmatpush3.bf16.msra.mxu1 %v652_v4  ;;  %v260_v4 = vld [vmem:[%s874_s3 + $0x8] sm:$0xff] }
  0x10   :  { %606 = vmatprep.subr.bf16.mxu0 %v653_v7  ;;  %634 = vmatprep.subr.bf16.mxu1 %v653_v7 }
  0x12   :  { %312 = vperm.xlu1 %648, %v250_v17   ;;  %307 = vperm.xlu0 %647, %v249_v18  }
  0x13   :  { %607 = vmatpush3.bf16.msra.mxu0 %v653_v7  ;;  %642 = vmatpush3.bf16.msra.mxu1 %v653_v7 }
  0x14   :  { %608 = vmatprep.subr.bf16.mxu0 %v654_v8  ;;  %635 = vmatprep.subr.bf16.mxu1 %v654_v8 }
  0x16   :  { %322 = vperm.xlu1 %648, %v252_v21   ;;  %317 = vperm.xlu0 %647, %v251_v22   ;;  %v265_v21 = vld [vmem:[%s874_s3 + $0x30] sm:$0xff] }
  0x17   :  { %609 = vmatpush3.bf16.msra.mxu0 %v654_v8  ;;  %643 = vmatpush3.bf16.msra.mxu1 %v654_v8  ;;  %v273_v22 = vld [vmem:[%s874_s3 + $0x70] sm:$0xff] }
  0x18   :  { %610 = vmatprep.subr.bf16.mxu0 %v655_v13  ;;  %636 = vmatprep.subr.bf16.mxu1 %v655_v13 }
  0x1a   :  { %332 = vperm.xlu1 %648, %v254_v25   ;;  %327 = vperm.xlu0 %647, %v253_v26  }
  0x1b   :  { %611 = vmatpush3.bf16.msra.mxu0 %v655_v13  ;;  %644 = vmatpush3.bf16.msra.mxu1 %v655_v13 }
  0x1c   :  { %612 = vmatprep.subr.bf16.mxu0 %v656_v16  ;;  %637 = vmatprep.subr.bf16.mxu1 %v656_v16 }
  0x1e   :  { %342 = vperm.xlu1 %648, %v256_v29   ;;  %337 = vperm.xlu0 %647, %v255_v30  }
  0x1f   :  { %613 = vmatpush3.bf16.msra.mxu0 %v656_v16  ;;  %645 = vmatpush3.bf16.msra.mxu1 %v656_v16 }
  0x22   :  { %615 = vmatmul.mubr.bf16.vlgmr.msra.gmra.mrb[0].mxu0 %v659_v19  ;;  %623 = vmatmul.mubr.bf16.vlgmr.msra.gmra.mrb[0].mxu1 %v660_v20 }
  0x23   :  { %618 = vmatprep.mubr.bf16.mxu0 %v661_v23  ;;  %626 = vmatprep.mubr.bf16.mxu1 %v662_v24 }
  0x24   :  { %352 = vperm.xlu1 %648, %v258_v31   ;;  %347 = vperm.xlu0 %647, %v257_v32  }
  0x2a   :  { %619 = vmatmul.mubr.bf16.gmra.mrb[4].mxu0 %v663_v27  ;;  %627 = vmatmul.mubr.bf16.gmra.mrb[4].mxu1 %v664_v28 }
  0x85   :  { %v288_v33 = vpop.permute.xlu1 %287  ;;  %v278_v34 = vpop.permute.xlu0 %277 }
  0x89   :  { %v293_v35 = vpop.permute.xlu1 %292  ;;  %v283_v36 = vpop.permute.xlu0 %282 }
  0x8d   :  { %v787_v37 = vpop.permute.xlu1 %302  ;;  %v789_v38 = vpop.permute.xlu0 %297 }
  0x91   :  { %v791_v39 = vpop.permute.xlu1 %312  ;;  %v308_v40 = vpop.permute.xlu0 %307 }
  0x95   :  { %v323_v41 = vpop.permute.xlu1 %322  ;;  %v318_v42 = vpop.permute.xlu0 %317 }
  0x99   :  { %v333_v43 = vpop.permute.xlu1 %332  ;;  %v328_v44 = vpop.permute.xlu0 %327 }
  0x9d   :  { %v793_v45 = vpop.permute.xlu1 %342  ;;  %v338_v46 = vpop.permute.xlu0 %337 }
  0xa3   :  { %v353_v15 = vpop.permute.xlu1 %352  ;;  %v348_v16 = vpop.permute.xlu0 %347 }
  0xf5   :  { %v616_v47 = vpop.f32.mrb[0].mxu0  ;;  %v624_v49 = vpop.f32.mrb[0].mxu1 }
  0xf6   :  { %v357_v51 = vmul.f32 %v616_v47, %v288_v33  ;;  %v365_v52 = vmul.f32 %v624_v49, %v328_v44  ;;  %v180_v53 = vpop.f32.mrb[1].mxu0  ;;  %v212_v55 = vpop.f32.mrb[1].mxu1  ;;  %v274_v49 = vld [vmem:[%s874_s3 + $0x78] sm:$0xff] }
  0xf7   :  { %v355_v57 = vmul.f32 %v278_v34, %v180_v53  ;;  %v363_v58 = vmul.f32 %v318_v42, %v212_v55  ;;  %v617_v59 = vpop.f32.mrb[2].mxu0  ;;  %v625_v61 = vpop.f32.mrb[2].mxu1  ;;  %v263_v34 = vld [vmem:[%s874_s3 + $0x20] sm:$0xff]  ;;  %v264_v53 = vld [vmem:[%s874_s3 + $0x28] sm:$0xff] }
  0xf8   :  { %v373_v63 = vadd.f32 %v357_v51, %v261_v48  ;;  %v381_v0 = vadd.f32 %v365_v52, %v269_v50  ;;  %v358_v1 = vmul.f32 %v617_v59, %v293_v35  ;;  %v366_v2 = vmul.f32 %v625_v61, %v333_v43  ;;  %v183_v3 = vpop.f32.mrb[3].mxu0  ;;  %v215_v5 = vpop.f32.mrb[3].mxu1  ;;  %v272_v55 = vld [vmem:[%s874_s3 + $0x68] sm:$0xff] }
  0xf9   :  { %v371_v7 = vadd.f32 %v355_v57, %v259_v54  ;;  %v379_v8 = vadd.f32 %v363_v58, %v267_v56  ;;  %v356_v9 = vmul.f32 %v283_v36, %v183_v3  ;;  %v364_v10 = vmul.f32 %v323_v41, %v215_v5  ;;  %v271_v36 = vld [vmem:[%s874_s3 + $0x60] sm:$0xff] }
  0xfa   :  { %v374_v11 = vadd.f32 %v358_v1, %v262_v60  ;;  %v382_v12 = vadd.f32 %v366_v2, %v270_v62  ;;  %v389_v17 = vmax.f32 %v373_v63, 0.0  ;;  %v397_v18 = vmax.f32 %v381_v0, 0.0 }
  0xfb   :  { %v372_v13 = vadd.f32 %v356_v9, %v260_v4  ;;  %v380_v14 = vadd.f32 %v364_v10, %v268_v6  ;;  %v387_v23 = vmax.f32 %v371_v7, 0.0  ;;  %v395_v24 = vmax.f32 %v379_v8, 0.0 }
  0xfc   :  { %v390_v19 = vmax.f32 %v374_v11, 0.0  ;;  %v398_v20 = vmax.f32 %v382_v12, 0.0 }
  0xfd   :  { %v388_v25 = vmax.f32 %v372_v13, 0.0  ;;  %v396_v26 = vmax.f32 %v380_v14, 0.0  ;;  %v620_v27 = vpop.f32.mrb[4].mxu0  ;;  %v628_v28 = vpop.f32.mrb[4].mxu1 }
  0xfe   :  { %v543_v29 = vpack.c.bf16 %v390_v19, %v389_v17  ;;  %v563_v30 = vpack.c.bf16 %v398_v20, %v397_v18  ;;  %v361_v31 = vmul.f32 %v620_v27, %v308_v40  ;;  %v369_v32 = vmul.f32 %v628_v28, %v348_v16  ;;  %v196_v33 = vpop.f32.mrb[5].mxu0  ;;  %v228_v35 = vpop.f32.mrb[5].mxu1  ;;  %v266_v40 = vld [vmem:[%s874_s3 + $0x38] sm:$0xff] }
  0xff   :  { %v538_v41 = vpack.c.bf16 %v388_v25, %v387_v23  ;;  %v558_v42 = vpack.c.bf16 %v396_v26, %v395_v24  ;;  %v359_v43 = vmul.f32 %v789_v38, %v196_v33  ;;  %v367_v44 = vmul.f32 %v338_v46, %v228_v35  ;;  %v621_v47 = vpop.f32.mrb[6].mxu0  ;;  %v629_v48 = vpop.f32.mrb[6].mxu1 }
 0x100   :  { %575 = vst [vmem:[%s875_s4 + $0x8] sm:$0xff] %v543_v29   ;;  %579 = vst [vmem:[%s875_s4 + $0x28] sm:$0xff] %v563_v30   ;;  %v377_v38 = vadd.f32 %v361_v31, %v265_v21  ;;  %v385_v46 = vadd.f32 %v369_v32, %v273_v22  ;;  %v362_v50 = vmul.f32 %v621_v47, %v791_v39  ;;  %v199_v52 = vpop.f32.mrb[7].mxu0  ;;  %v231_v54 = vpop.f32.mrb[7].mxu1 }
 0x101   :  { %v370_v51 = vmul.f32 %v629_v48, %v353_v15  ;;  %539 = vst [vmem:[%s875_s4] sm:$0xff] %v538_v41   ;;  %578 = vst [vmem:[%s875_s4 + $0x20] sm:$0xff] %v558_v42   ;;  %v375_v39 = vadd.f32 %v359_v43, %v263_v34  ;;  %v383_v56 = vadd.f32 %v367_v44, %v271_v36 }
 0x102   :  { %v360_v57 = vmul.f32 %v787_v37, %v199_v52  ;;  %v368_v58 = vmul.f32 %v793_v45, %v231_v54  ;;  %v378_v59 = vadd.f32 %v362_v50, %v266_v40  ;;  %v393_v63 = vmax.f32 %v377_v38, 0.0 }
 0x103   :  { %v386_v60 = vadd.f32 %v370_v51, %v274_v49  ;;  %v401_v0 = vmax.f32 %v385_v46, 0.0  ;;  %v391_v3 = vmax.f32 %v375_v39, 0.0  ;;  %v399_v4 = vmax.f32 %v383_v56, 0.0 }
 0x104   :  { %v376_v61 = vadd.f32 %v360_v57, %v264_v53  ;;  %v384_v62 = vadd.f32 %v368_v58, %v272_v55  ;;  %v394_v1 = vmax.f32 %v378_v59, 0.0 }
 0x105   :  { %v402_v2 = vmax.f32 %v386_v60, 0.0 }
 0x106   :  { %v392_v5 = vmax.f32 %v376_v61, 0.0  ;;  %v400_v6 = vmax.f32 %v384_v62, 0.0  ;;  %v553_v7 = vpack.c.bf16 %v394_v1, %v393_v63 }
 0x107   :  { %v573_v8 = vpack.c.bf16 %v402_v2, %v401_v0 }
 0x108   :  { %v548_v9 = vpack.c.bf16 %v392_v5, %v391_v3  ;;  %v568_v10 = vpack.c.bf16 %v400_v6, %v399_v4  ;;  %577 = vst [vmem:[%s875_s4 + $0x18] sm:$0xff] %v553_v7  }
 0x109   :  { %581 = vst [vmem:[%s875_s4 + $0x38] sm:$0xff] %v573_v8  }
 0x10a   :  { %576 = vst [vmem:[%s875_s4 + $0x10] sm:$0xff] %v548_v9   ;;  %580 = vst [vmem:[%s875_s4 + $0x30] sm:$0xff] %v568_v10  }

// kernel: modified_sage_forward.11
= control target key start
LH: loop header
LB: loop body
LE: loop exit
PB: predicated region body
PF: predicated region fallthrough
CT: control target
= control target key end

     0   :  { %v749_v1 = vmov 0   ;;  %v387_v42 = vlaneseq  ;;  %s1124_s1 = inlined_call_operand.vmem [shape: bf16[128,128], index: 1, kind: input, shape index: {}]   ;;  %s1125_s0 = inlined_call_operand.vmem [shape: bf16[128,128], index: 0, kind: input, shape index: {}]   ;;  %s1126_s2 = inlined_call_operand.vmem [shape: f32[128,1], index: 2, kind: input, shape index: {}]   ;;  %s1127_s3 = inlined_call_operand.vmem [shape: f32[128,128], index: 3, kind: input, shape index: {}]   ;;  %s1128_s4 = inlined_call_operand.vmem [shape: f32[128,128], index: 4, kind: output, shape index: {}]  }
   0x1   :  { %v669_v0 = vld [vmem:[%s1124_s1] sm:$0xff]   ;;  %667 = vset.pattern.permute.xlu0 %v749_v1  ;;  %668 = vset.pattern.permute.xlu1 %v749_v1  ;;  %v670_v2 = vld [vmem:[%s1124_s1 + $0x8] sm:$0xff]   ;;  %v671_v3 = vld [vmem:[%s1124_s1 + $0x10] sm:$0xff]  }
   0x2   :  { %618 = vmatprep.subr.bf16.mxu0 %v669_v0  ;;  %650 = vmatprep.subr.bf16.mxu1 %v669_v0  ;;  %v672_v4 = vld [vmem:[%s1124_s1 + $0x18] sm:$0xff]   ;;  %v677_v5 = vld [vmem:[%s1125_s0] sm:$0xff]   ;;  %v674_v8 = vld [vmem:[%s1124_s1 + $0x28] sm:$0xff]   ;;  %v875_v43 = vand.u32 127, %v387_v42 }
   0x3   :  { %619 = vmatpush3.bf16.msra.mxu0 %v669_v0  ;;  %658 = vmatpush3.bf16.msra.mxu1 %v669_v0  ;;  %v678_v6 = vld [vmem:[%s1125_s0 + $0x20] sm:$0xff]   ;;  %v245_v10 = vld [vmem:[%s1126_s2 + $0x10] sm:$0xff]  ;;  %v244_v11 = vld [vmem:[%s1126_s2 + $0x8] sm:$0xff] }
   0x4   :  { %620 = vmatprep.subr.bf16.mxu0 %v670_v2  ;;  %651 = vmatprep.subr.bf16.mxu1 %v670_v2  ;;  %v673_v7 = vld [vmem:[%s1124_s1 + $0x20] sm:$0xff]   ;;  %v246_v12 = vld [vmem:[%s1126_s2 + $0x18] sm:$0xff]  ;;  %v675_v13 = vld [vmem:[%s1124_s1 + $0x30] sm:$0xff]   ;;  %vm389_vm0 = vcmp.lt.s32.totalorder %v875_v43, 8 }
   0x5   :  { %634 = vmatprep.mubr.bf16.mxu0 %v677_v5  ;;  %642 = vmatprep.mubr.bf16.mxu1 %v678_v6  ;;  %v243_v9 = vld [vmem:[%s1126_s2] sm:$0xff]  ;;  %v248_v15 = vld [vmem:[%s1126_s2 + $0x28] sm:$0xff]  ;;  %v676_v16 = vld [vmem:[%s1124_s1 + $0x38] sm:$0xff]  }
   0x6   :  { %277 = vperm.xlu0 %667, %v243_v9   ;;  %287 = vperm.xlu1 %668, %v245_v10   ;;  %v247_v14 = vld [vmem:[%s1126_s2 + $0x20] sm:$0xff]  ;;  %v249_v17 = vld [vmem:[%s1126_s2 + $0x30] sm:$0xff]  ;;  %v250_v18 = vld [vmem:[%s1126_s2 + $0x38] sm:$0xff] }
   0x7   :  { %621 = vmatpush3.bf16.msra.mxu0 %v670_v2  ;;  %659 = vmatpush3.bf16.msra.mxu1 %v670_v2  ;;  %v679_v19 = vld [vmem:[%s1125_s0 + $0x8] sm:$0xff]   ;;  %v251_v21 = vld [vmem:[%s1126_s2 + $0x40] sm:$0xff]  ;;  %v681_v23 = vld [vmem:[%s1125_s0 + $0x10] sm:$0xff]  }
   0x8   :  { %622 = vmatprep.subr.bf16.mxu0 %v671_v3  ;;  %652 = vmatprep.subr.bf16.mxu1 %v671_v3  ;;  %v680_v20 = vld [vmem:[%s1125_s0 + $0x28] sm:$0xff]   ;;  %v682_v24 = vld [vmem:[%s1125_s0 + $0x30] sm:$0xff]   ;;  %v254_v26 = vld [vmem:[%s1126_s2 + $0x58] sm:$0xff] }
   0x9   :  { %v252_v22 = vld [vmem:[%s1126_s2 + $0x48] sm:$0xff]  ;;  %v253_v25 = vld [vmem:[%s1126_s2 + $0x50] sm:$0xff]  ;;  %v683_v27 = vld [vmem:[%s1125_s0 + $0x18] sm:$0xff]  }
   0xa   :  { %282 = vperm.xlu0 %667, %v244_v11   ;;  %292 = vperm.xlu1 %668, %v246_v12   ;;  %v684_v28 = vld [vmem:[%s1125_s0 + $0x38] sm:$0xff]   ;;  %v255_v29 = vld [vmem:[%s1126_s2 + $0x60] sm:$0xff]  ;;  %v256_v30 = vld [vmem:[%s1126_s2 + $0x68] sm:$0xff] }
   0xb   :  { %623 = vmatpush3.bf16.msra.mxu0 %v671_v3  ;;  %660 = vmatpush3.bf16.msra.mxu1 %v671_v3  ;;  %v257_v31 = vld [vmem:[%s1126_s2 + $0x70] sm:$0xff]  ;;  %v258_v32 = vld [vmem:[%s1126_s2 + $0x78] sm:$0xff]  ;;  %v267_v58 = vld [vmem:[%s1127_s3 + $0x40] sm:$0xff] }
   0xc   :  { %624 = vmatprep.subr.bf16.mxu0 %v672_v4  ;;  %653 = vmatprep.subr.bf16.mxu1 %v672_v4  ;;  %v269_v48 = vld [vmem:[%s1127_s3 + $0x50] sm:$0xff]  ;;  %v259_v59 = vld [vmem:[%s1127_s3] sm:$0xff]  ;;  %v262_v6 = vld [vmem:[%s1127_s3 + $0x18] sm:$0xff] }
   0xd   :  { %v261_v49 = vld [vmem:[%s1127_s3 + $0x10] sm:$0xff]  ;;  %v271_v42 = vld [vmem:[%s1127_s3 + $0x60] sm:$0xff] }
   0xe   :  { %297 = vperm.xlu0 %667, %v247_v14   ;;  %302 = vperm.xlu1 %668, %v248_v15  }
   0xf   :  { %625 = vmatpush3.bf16.msra.mxu0 %v672_v4  ;;  %661 = vmatpush3.bf16.msra.mxu1 %v672_v4 }
  0x10   :  { %626 = vmatprep.subr.bf16.mxu0 %v673_v7  ;;  %654 = vmatprep.subr.bf16.mxu1 %v673_v7 }
  0x12   :  { %307 = vperm.xlu0 %667, %v249_v17   ;;  %312 = vperm.xlu1 %668, %v250_v18  }
  0x13   :  { %627 = vmatpush3.bf16.msra.mxu0 %v673_v7  ;;  %662 = vmatpush3.bf16.msra.mxu1 %v673_v7  ;;  %v260_v7 = vld [vmem:[%s1127_s3 + $0x8] sm:$0xff] }
  0x14   :  { %628 = vmatprep.subr.bf16.mxu0 %v674_v8  ;;  %655 = vmatprep.subr.bf16.mxu1 %v674_v8 }
  0x16   :  { %317 = vperm.xlu0 %667, %v251_v21   ;;  %322 = vperm.xlu1 %668, %v252_v22   ;;  %v265_v22 = vld [vmem:[%s1127_s3 + $0x30] sm:$0xff] }
  0x17   :  { %629 = vmatpush3.bf16.msra.mxu0 %v674_v8  ;;  %663 = vmatpush3.bf16.msra.mxu1 %v674_v8 }
  0x18   :  { %630 = vmatprep.subr.bf16.mxu0 %v675_v13  ;;  %656 = vmatprep.subr.bf16.mxu1 %v675_v13 }
  0x1a   :  { %327 = vperm.xlu0 %667, %v253_v25   ;;  %332 = vperm.xlu1 %668, %v254_v26  }
  0x1b   :  { %631 = vmatpush3.bf16.msra.mxu0 %v675_v13  ;;  %664 = vmatpush3.bf16.msra.mxu1 %v675_v13  ;;  %v270_v13 = vld [vmem:[%s1127_s3 + $0x58] sm:$0xff] }
  0x1c   :  { %632 = vmatprep.subr.bf16.mxu0 %v676_v16  ;;  %657 = vmatprep.subr.bf16.mxu1 %v676_v16 }
  0x1e   :  { %337 = vperm.xlu0 %667, %v255_v29   ;;  %342 = vperm.xlu1 %668, %v256_v30  }
  0x1f   :  { %633 = vmatpush3.bf16.msra.mxu0 %v676_v16  ;;  %665 = vmatpush3.bf16.msra.mxu1 %v676_v16 }
  0x22   :  { %635 = vmatmul.mubr.bf16.vlgmr.msra.gmra.mrb[0].mxu0 %v679_v19  ;;  %643 = vmatmul.mubr.bf16.vlgmr.msra.gmra.mrb[0].mxu1 %v680_v20 }
  0x23   :  { %638 = vmatprep.mubr.bf16.mxu0 %v681_v23  ;;  %646 = vmatprep.mubr.bf16.mxu1 %v682_v24 }
  0x24   :  { %347 = vperm.xlu0 %667, %v257_v31   ;;  %352 = vperm.xlu1 %668, %v258_v32   ;;  %v268_v32 = vld [vmem:[%s1127_s3 + $0x48] sm:$0xff] }
  0x2a   :  { %639 = vmatmul.mubr.bf16.gmra.mrb[4].mxu0 %v683_v27  ;;  %647 = vmatmul.mubr.bf16.gmra.mrb[4].mxu1 %v684_v28 }
  0x85   :  { %v278_v33 = vpop.permute.xlu0 %277  ;;  %v288_v34 = vpop.permute.xlu1 %287 }
  0x89   :  { %v283_v35 = vpop.permute.xlu0 %282  ;;  %v293_v36 = vpop.permute.xlu1 %292 }
  0x8d   :  { %v298_v37 = vpop.permute.xlu0 %297  ;;  %v871_v38 = vpop.permute.xlu1 %302 }
  0x91   :  { %v308_v39 = vpop.permute.xlu0 %307  ;;  %v873_v40 = vpop.permute.xlu1 %312 }
  0x95   :  { %v318_v41 = vpop.permute.xlu0 %317  ;;  %v323_v44 = vpop.permute.xlu1 %322 }
  0x99   :  { %v328_v45 = vpop.permute.xlu0 %327  ;;  %v333_v8 = vpop.permute.xlu1 %332 }
  0x9d   :  { %v338_v27 = vpop.permute.xlu0 %337 }
  0xf5   :  { %v636_v46 = vpop.f32.mrb[0].mxu0  ;;  %v644_v47 = vpop.f32.mrb[0].mxu1 }
  0xf6   :  { %v357_v50 = vmul.f32 %v636_v46, %v288_v34  ;;  %v365_v51 = vmul.f32 %v644_v47, %v328_v45  ;;  %v180_v52 = vpop.f32.mrb[1].mxu0  ;;  %v212_v53 = vpop.f32.mrb[1].mxu1 }
  0xf7   :  { %v355_v54 = vmul.f32 %v278_v33, %v180_v52  ;;  %v363_v55 = vmul.f32 %v318_v41, %v212_v53  ;;  %v637_v56 = vpop.f32.mrb[2].mxu0  ;;  %v645_v57 = vpop.f32.mrb[2].mxu1  ;;  %v263_v33 = vld [vmem:[%s1127_s3 + $0x20] sm:$0xff]  ;;  %v264_v53 = vld [vmem:[%s1127_s3 + $0x28] sm:$0xff] }
  0xf8   :  { %v183_v60 = vpop.f32.mrb[3].mxu0  ;;  %v215_v61 = vpop.f32.mrb[3].mxu1  ;;  %v381_v62 = vadd.f32 %v365_v51, %v269_v48  ;;  %v373_v63 = vadd.f32 %v357_v50, %v261_v49  ;;  %v358_v0 = vmul.f32 %v637_v56, %v293_v36  ;;  %v366_v9 = vmul.f32 %v645_v57, %v333_v8  ;;  %v273_v51 = vld [vmem:[%s1127_s3 + $0x70] sm:$0xff] }
  0xf9   :  { %v356_v1 = vmul.f32 %v283_v35, %v183_v60  ;;  %v379_v4 = vadd.f32 %v363_v55, %v267_v58  ;;  %v371_v5 = vadd.f32 %v355_v54, %v259_v59  ;;  %v364_v25 = vmul.f32 %v323_v44, %v215_v61  ;;  %v266_v44 = vld [vmem:[%s1127_s3 + $0x38] sm:$0xff]  ;;  %v348_v45 = vpop.permute.xlu0 %347  ;;  %v343_v52 = vpop.permute.xlu1 %342  ;;  %v272_v58 = vld [vmem:[%s1127_s3 + $0x68] sm:$0xff] }
  0xfa   :  { %v892_v2 = vsel %vm389_vm0, %v381_v62, -1e+30  ;;  %v896_v3 = vsel %vm389_vm0, %v373_v63, -1e+30  ;;  %v374_v12 = vadd.f32 %v358_v0, %v262_v6  ;;  %v382_v26 = vadd.f32 %v366_v9, %v270_v13  ;;  %v274_v0 = vld [vmem:[%s1127_s3 + $0x78] sm:$0xff] }
  0xfb   :  { %426 = vmax.xlane.f32.xlu1 %v892_v2  ;;  %410 = vmax.xlane.f32.xlu0 %v896_v3  ;;  %v911_v17 = vsel %vm389_vm0, %v379_v4, -1e+30  ;;  %v915_v18 = vsel %vm389_vm0, %v371_v5, -1e+30  ;;  %v372_v19 = vadd.f32 %v356_v1, %v260_v7  ;;  %v380_v35 = vadd.f32 %v364_v25, %v268_v32 }
  0xfc   :  { %v393_v29 = vsel %vm389_vm0, %v374_v12, -1e+30  ;;  %v937_v34 = vsel %vm389_vm0, %v382_v26, -1e+30 }
  0xfd   :  { %v640_v10 = vpop.f32.mrb[4].mxu0  ;;  %v648_v11 = vpop.f32.mrb[4].mxu1  ;;  %v926_v30 = vsel %vm389_vm0, %v372_v19, -1e+30 }
  0xfe   :  { %v361_v14 = vmul.f32 %v640_v10, %v308_v39  ;;  %v196_v15 = vpop.f32.mrb[5].mxu0  ;;  %v228_v16 = vpop.f32.mrb[5].mxu1  ;;  %v369_v46 = vmul.f32 %v648_v11, %v348_v45 }
  0xff   :  { %422 = vmax.xlane.f32.xlu1 %v911_v17  ;;  %v649_v20 = vpop.f32.mrb[6].mxu1  ;;  %406 = vmax.xlane.f32.xlu0 %v915_v18  ;;  %v641_v21 = vpop.f32.mrb[6].mxu0  ;;  %v359_v28 = vmul.f32 %v298_v37, %v196_v15  ;;  %v367_v36 = vmul.f32 %v338_v27, %v228_v16 }
 0x100   :  { %v199_v23 = vpop.f32.mrb[7].mxu0  ;;  %v231_v24 = vpop.f32.mrb[7].mxu1  ;;  %v377_v31 = vadd.f32 %v361_v14, %v265_v22  ;;  %v362_v37 = vmul.f32 %v641_v21, %v873_v40  ;;  %v399_v40 = vsel %vm389_vm0, %v380_v35, -1e+30  ;;  %v385_v54 = vadd.f32 %v369_v46, %v273_v51 }
 0x101   :  { %v375_v41 = vadd.f32 %v359_v28, %v263_v33  ;;  %v360_v47 = vmul.f32 %v871_v38, %v199_v23  ;;  %v383_v49 = vadd.f32 %v367_v36, %v271_v42  ;;  %v368_v38 = vmul.f32 %v343_v52, %v231_v24  ;;  %v353_v59 = vpop.permute.xlu1 %352 }
 0x102   :  { %v942_v39 = vsel %vm389_vm0, %v377_v31, -1e+30  ;;  %v378_v50 = vadd.f32 %v362_v37, %v266_v44  ;;  %v370_v60 = vmul.f32 %v649_v20, %v353_v59  ;;  %v978_v61 = vsel %vm389_vm0, %v385_v54, -1e+30 }
 0x103   :  { %412 = vmax.xlane.f32.xlu0 %v393_v29  ;;  %408 = vmax.xlane.f32.xlu1 %v926_v30  ;;  %v957_v48 = vsel %vm389_vm0, %v375_v41, -1e+30  ;;  %v968_v55 = vsel %vm389_vm0, %v383_v49, -1e+30  ;;  %v376_v57 = vadd.f32 %v360_v47, %v264_v53  ;;  %v384_v63 = vadd.f32 %v368_v38, %v272_v58 }
 0x104   :  { %v397_v56 = vsel %vm389_vm0, %v378_v50, -1e+30  ;;  %v386_v4 = vadd.f32 %v370_v60, %v274_v0 }
 0x105   :  { %v982_v62 = vsel %vm389_vm0, %v376_v57, -1e+30  ;;  %v991_v1 = vsel %vm389_vm0, %v384_v63, -1e+30 }
 0x106   :  { %v996_v5 = vsel %vm389_vm0, %v386_v4, -1e+30 }
 0x107   :  { %428 = vmax.xlane.f32.xlu0 %v937_v34  ;;  %418 = vmax.xlane.f32.xlu1 %v942_v39 }
 0x10b   :  { %424 = vmax.xlane.f32.xlu0 %v399_v40  ;;  %414 = vmax.xlane.f32.xlu1 %v957_v48 }
 0x10f   :  { %430 = vmax.xlane.f32.xlu1 %v968_v55  ;;  %420 = vmax.xlane.f32.xlu0 %v397_v56 }
 0x113   :  { %434 = vmax.xlane.f32.xlu1 %v978_v61  ;;  %416 = vmax.xlane.f32.xlu0 %v982_v62 }
 0x117   :  { %432 = vmax.xlane.f32.xlu0 %v991_v1 }
 0x11b   :  { %436 = vmax.xlane.f32.xlu0 %v996_v5 }
 0x188   :  { %v427_v6 = vpop.xlane.xlu1 %426  ;;  %v411_v7 = vpop.xlane.xlu0 %410 }
 0x189   :  { %v1000_v8 = vsub.f32 %v896_v3, %v411_v7  ;;  %v1003_v9 = vsub.f32 %v892_v2, %v427_v6 }
 0x18b   :  { %v458_v10 = vmul.f32 1.442695, %v1000_v8  ;;  %v474_v13 = vmul.f32 1.442695, %v1003_v9 }
 0x18c   :  { %v423_v11 = vpop.xlane.xlu1 %422  ;;  %v407_v12 = vpop.xlane.xlu0 %406 }
 0x18d   :  { %685 = vpow2.f32 %v458_v10  ;;  %v1008_v43 = vsub.f32 %v915_v18, %v407_v12  ;;  %v1013_v3 = vsub.f32 %v911_v17, %v423_v11 }
 0x18e   :  { %687 = vpow2.f32 %v474_v13 }
 0x18f   :  { %v454_v2 = vmul.f32 1.442695, %v1008_v43  ;;  %v470_v23 = vmul.f32 1.442695, %v1013_v3 }
 0x190   :  { %v413_v14 = vpop.xlane.xlu0 %412  ;;  %v409_v15 = vpop.xlane.xlu1 %408 }
 0x191   :  { %v1010_v16 = vsub.f32 %v393_v29, %v413_v14  ;;  %v1018_v22 = vsub.f32 %v926_v30, %v409_v15 }
 0x193   :  { %v460_v19 = vmul.f32 1.442695, %v1010_v16  ;;  %v456_v28 = vmul.f32 1.442695, %v1018_v22 }
 0x194   :  { %v429_v20 = vpop.xlane.xlu0 %428  ;;  %v419_v21 = vpop.xlane.xlu1 %418 }
 0x195   :  { %689 = vpow2.f32 %v460_v19  ;;  %v1021_v18 = vsub.f32 %v937_v34, %v429_v20  ;;  %v1025_v24 = vsub.f32 %v942_v39, %v419_v21 }
 0x196   :  { %691 = vpow2.f32 %v454_v2 }
 0x197   :  { %v476_v17 = vmul.f32 1.442695, %v1021_v18  ;;  %v686_v25 = vpop.eup %685  ;;  %v466_v30 = vmul.f32 1.442695, %v1025_v24 }
 0x198   :  { %v425_v26 = vpop.xlane.xlu0 %424  ;;  %v415_v27 = vpop.xlane.xlu1 %414  ;;  %490 = vadd.xlane.f32.xlu1 %v686_v25 }
 0x199   :  { %693 = vpow2.f32 %v476_v17  ;;  %v1029_v29 = vsub.f32 %v399_v40, %v425_v26  ;;  %v1033_v31 = vsub.f32 %v957_v48, %v415_v27  ;;  %v688_v32 = vpop.eup %687 }
 0x19a   :  { %695 = vpow2.f32 %v470_v23 }
 0x19b   :  { %697 = vpow2.f32 %v456_v28  ;;  %v472_v35 = vmul.f32 1.442695, %v1029_v29  ;;  %v462_v37 = vmul.f32 1.442695, %v1033_v31 }
 0x19c   :  { %v431_v33 = vpop.xlane.xlu1 %430  ;;  %v421_v34 = vpop.xlane.xlu0 %420  ;;  %506 = vadd.xlane.f32.xlu1 %v688_v32  ;;  %699 = vpow2.f32 %v466_v30 }
 0x19d   :  { %v1036_v36 = vsub.f32 %v397_v56, %v421_v34  ;;  %v1040_v39 = vsub.f32 %v968_v55, %v431_v33  ;;  %701 = vpow2.f32 %v472_v35 }
 0x19e   :  { %703 = vpow2.f32 %v462_v37 }
 0x19f   :  { %v690_v41 = vpop.eup %689  ;;  %v468_v46 = vmul.f32 1.442695, %v1036_v36  ;;  %v478_v47 = vmul.f32 1.442695, %v1040_v39 }
 0x1a0   :  { %v692_v42 = vpop.eup %691  ;;  %v435_v44 = vpop.xlane.xlu1 %434  ;;  %492 = vadd.xlane.f32.xlu0 %v690_v41 }
 0x1a1   :  { %v417_v45 = vpop.xlane.xlu0 %416  ;;  %486 = vadd.xlane.f32.xlu1 %v692_v42  ;;  %v1048_v48 = vsub.f32 %v978_v61, %v435_v44  ;;  %705 = vpow2.f32 %v468_v46 }
 0x1a2   :  { %v1044_v40 = vsub.f32 %v982_v62, %v417_v45  ;;  %707 = vpow2.f32 %v478_v47 }
 0x1a3   :  { %v694_v49 = vpop.eup %693  ;;  %v482_v54 = vmul.f32 1.442695, %v1048_v48 }
 0x1a4   :  { %v696_v50 = vpop.eup %695  ;;  %508 = vadd.xlane.f32.xlu0 %v694_v49  ;;  %v464_v52 = vmul.f32 1.442695, %v1044_v40 }
 0x1a5   :  { %v433_v51 = vpop.xlane.xlu0 %432  ;;  %502 = vadd.xlane.f32.xlu1 %v696_v50  ;;  %v698_v38 = vpop.eup %697 }
 0x1a6   :  { %v1052_v53 = vsub.f32 %v991_v1, %v433_v51  ;;  %v700_v55 = vpop.eup %699  ;;  %709 = vpow2.f32 %v464_v52 }
 0x1a7   :  { %711 = vpow2.f32 %v482_v54  ;;  %v702_v59 = vpop.eup %701 }
 0x1a8   :  { %488 = vadd.xlane.f32.xlu0 %v698_v38  ;;  %v480_v57 = vmul.f32 1.442695, %v1052_v53  ;;  %v704_v60 = vpop.eup %703 }
 0x1a9   :  { %v437_v56 = vpop.xlane.xlu0 %436  ;;  %498 = vadd.xlane.f32.xlu1 %v700_v55 }
 0x1aa   :  { %v1057_v58 = vsub.f32 %v996_v5, %v437_v56  ;;  %713 = vpow2.f32 %v480_v57 }
 0x1ab   :  { %v706_v62 = vpop.eup %705 }
 0x1ac   :  { %504 = vadd.xlane.f32.xlu0 %v702_v59  ;;  %v484_v61 = vmul.f32 1.442695, %v1057_v58  ;;  %v708_v63 = vpop.eup %707 }
 0x1ad   :  { %494 = vadd.xlane.f32.xlu1 %v704_v60 }
 0x1ae   :  { %715 = vpow2.f32 %v484_v61 }
 0x1b0   :  { %500 = vadd.xlane.f32.xlu0 %v706_v62  ;;  %v710_v0 = vpop.eup %709 }
 0x1b1   :  { %510 = vadd.xlane.f32.xlu1 %v708_v63  ;;  %v712_v1 = vpop.eup %711 }
 0x1b4   :  { %496 = vadd.xlane.f32.xlu0 %v710_v0  ;;  %v714_v4 = vpop.eup %713 }
 0x1b5   :  { %514 = vadd.xlane.f32.xlu1 %v712_v1 }
 0x1b8   :  { %512 = vadd.xlane.f32.xlu0 %v714_v4  ;;  %v716_v5 = vpop.eup %715 }
 0x1bc   :  { %516 = vadd.xlane.f32.xlu0 %v716_v5 }
 0x225   :  { %v491_v6 = vpop.xlane.xlu1 %490 }
 0x226   :  { %717 = vlog2.f32 %v491_v6 }
 0x229   :  { %v507_v7 = vpop.xlane.xlu1 %506 }
 0x22a   :  { %719 = vlog2.f32 %v507_v7 }
 0x22d   :  { %v493_v10 = vpop.xlane.xlu0 %492 }
 0x22e   :  { %v487_v11 = vpop.xlane.xlu1 %486  ;;  %721 = vlog2.f32 %v493_v10 }
 0x22f   :  { %723 = vlog2.f32 %v487_v11 }
 0x230   :  { %v718_v12 = vpop.eup %717 }
 0x231   :  { %v509_v13 = vpop.xlane.xlu0 %508  ;;  %v523_v14 = vmul.f32 0.6931472, %v718_v12 }
 0x232   :  { %v503_v15 = vpop.xlane.xlu1 %502  ;;  %725 = vlog2.f32 %v509_v13 }
 0x233   :  { %727 = vlog2.f32 %v503_v15  ;;  %v552_v2 = vsub.f32 %v1000_v8, %v523_v14 }
 0x234   :  { %v720_v19 = vpop.eup %719 }
 0x235   :  { %v489_v20 = vpop.xlane.xlu0 %488  ;;  %568 = vst [vmem:[%s1128_s4 + $0x10] sm:$0xff] %v552_v2  ;;  %v539_v21 = vmul.f32 0.6931472, %v720_v19 }
 0x236   :  { %v499_v23 = vpop.xlane.xlu1 %498  ;;  %729 = vlog2.f32 %v489_v20 }
 0x237   :  { %731 = vlog2.f32 %v499_v23  ;;  %v560_v25 = vsub.f32 %v1003_v9, %v539_v21 }
 0x238   :  { %v722_v17 = vpop.eup %721 }
 0x239   :  { %v724_v26 = vpop.eup %723  ;;  %v525_v27 = vmul.f32 0.6931472, %v722_v17  ;;  %v505_v28 = vpop.xlane.xlu0 %504  ;;  %576 = vst [vmem:[%s1128_s4 + $0x50] sm:$0xff] %v560_v25 }
 0x23a   :  { %v519_v8 = vmul.f32 0.6931472, %v724_v26  ;;  %v495_v30 = vpop.xlane.xlu1 %494  ;;  %733 = vlog2.f32 %v505_v28 }
 0x23b   :  { %v553_v32 = vsub.f32 %v1010_v16, %v525_v27  ;;  %735 = vlog2.f32 %v495_v30 }
 0x23c   :  { %v726_v33 = vpop.eup %725  ;;  %v550_v34 = vsub.f32 %v1008_v43, %v519_v8 }
 0x23d   :  { %v728_v35 = vpop.eup %727  ;;  %569 = vst [vmem:[%s1128_s4 + $0x18] sm:$0xff] %v553_v32  ;;  %v541_v9 = vmul.f32 0.6931472, %v726_v33  ;;  %v501_v37 = vpop.xlane.xlu0 %500 }
 0x23e   :  { %566 = vst [vmem:[%s1128_s4] sm:$0xff] %v550_v34  ;;  %v535_v41 = vmul.f32 0.6931472, %v728_v35  ;;  %v511_v42 = vpop.xlane.xlu1 %510  ;;  %737 = vlog2.f32 %v501_v37 }
 0x23f   :  { %v561_v16 = vsub.f32 %v1021_v18, %v541_v9  ;;  %739 = vlog2.f32 %v511_v42 }
 0x240   :  { %v730_v44 = vpop.eup %729  ;;  %v558_v43 = vsub.f32 %v1013_v3, %v535_v41 }
 0x241   :  { %v732_v45 = vpop.eup %731  ;;  %577 = vst [vmem:[%s1128_s4 + $0x58] sm:$0xff] %v561_v16  ;;  %v521_v46 = vmul.f32 0.6931472, %v730_v44  ;;  %v497_v47 = vpop.xlane.xlu0 %496 }
 0x242   :  { %574 = vst [vmem:[%s1128_s4 + $0x40] sm:$0xff] %v558_v43  ;;  %v531_v49 = vmul.f32 0.6931472, %v732_v45  ;;  %v515_v50 = vpop.xlane.xlu1 %514  ;;  %741 = vlog2.f32 %v497_v47 }
 0x243   :  { %v551_v18 = vsub.f32 %v1018_v22, %v521_v46  ;;  %743 = vlog2.f32 %v515_v50 }
 0x244   :  { %v734_v51 = vpop.eup %733  ;;  %v556_v3 = vsub.f32 %v1025_v24, %v531_v49 }
 0x245   :  { %v736_v52 = vpop.eup %735  ;;  %567 = vst [vmem:[%s1128_s4 + $0x8] sm:$0xff] %v551_v18  ;;  %v537_v54 = vmul.f32 0.6931472, %v734_v51  ;;  %v513_v38 = vpop.xlane.xlu0 %512 }
 0x246   :  { %572 = vst [vmem:[%s1128_s4 + $0x30] sm:$0xff] %v556_v3  ;;  %v527_v55 = vmul.f32 0.6931472, %v736_v52  ;;  %745 = vlog2.f32 %v513_v38 }
 0x247   :  { %v559_v56 = vsub.f32 %v1029_v29, %v537_v54 }
 0x248   :  { %v738_v22 = vpop.eup %737  ;;  %v554_v57 = vsub.f32 %v1033_v31, %v527_v55 }
 0x249   :  { %v740_v59 = vpop.eup %739  ;;  %575 = vst [vmem:[%s1128_s4 + $0x48] sm:$0xff] %v559_v56  ;;  %v533_v24 = vmul.f32 0.6931472, %v738_v22  ;;  %v517_v60 = vpop.xlane.xlu0 %516 }
 0x24a   :  { %570 = vst [vmem:[%s1128_s4 + $0x20] sm:$0xff] %v554_v57  ;;  %v543_v61 = vmul.f32 0.6931472, %v740_v59  ;;  %747 = vlog2.f32 %v517_v60 }
 0x24b   :  { %v557_v62 = vsub.f32 %v1036_v36, %v533_v24 }
 0x24c   :  { %v742_v63 = vpop.eup %741  ;;  %v562_v29 = vsub.f32 %v1040_v39, %v543_v61 }
 0x24d   :  { %v744_v0 = vpop.eup %743  ;;  %573 = vst [vmem:[%s1128_s4 + $0x38] sm:$0xff] %v557_v62  ;;  %v529_v31 = vmul.f32 0.6931472, %v742_v63 }
 0x24e   :  { %578 = vst [vmem:[%s1128_s4 + $0x60] sm:$0xff] %v562_v29  ;;  %v547_v1 = vmul.f32 0.6931472, %v744_v0 }
 0x24f   :  { %v555_v4 = vsub.f32 %v1044_v40, %v529_v31 }
 0x250   :  { %v746_v5 = vpop.eup %745  ;;  %v564_v6 = vsub.f32 %v1048_v48, %v547_v1 }
 0x251   :  { %571 = vst [vmem:[%s1128_s4 + $0x28] sm:$0xff] %v555_v4  ;;  %v545_v36 = vmul.f32 0.6931472, %v746_v5 }
 0x252   :  { %580 = vst [vmem:[%s1128_s4 + $0x70] sm:$0xff] %v564_v6 }
 0x253   :  { %v563_v39 = vsub.f32 %v1052_v53, %v545_v36 }
 0x254   :  { %v748_v7 = vpop.eup %747 }
 0x255   :  { %579 = vst [vmem:[%s1128_s4 + $0x68] sm:$0xff] %v563_v39  ;;  %v549_v40 = vmul.f32 0.6931472, %v748_v7 }
 0x257   :  { %v565_v10 = vsub.f32 %v1057_v58, %v549_v40 }
 0x259   :  { %581 = vst [vmem:[%s1128_s4 + $0x78] sm:$0xff] %v565_v10 }

</bundles_post_ra>
